<compile_context>
chip_gen: v6e
topology: v6e:2x2x1
jax: 0.10.0
libtpu: 0.0.40
codegen_flags: <defaults>
</compile_context>

<pallas_src>
import jax
import jax.numpy as jnp
from jax.experimental import pallas as pl
from jax.experimental.pallas import tpu as pltpu


def _round_up(a, b):
    return ((a + b - 1) // b) * b


def _choose_tiles(n_pad):
    """Pick (TM, TK) dividing n_pad (n_pad is a multiple of 128)."""
    # TK: largest of {512, 256, 128} dividing n_pad (A block's lane dim -> x128).
    tk = 128
    for cand in (512, 256):
        if n_pad % cand == 0:
            tk = cand
            break
    # TM: largest multiple-of-8 divisor of n_pad, capped at 1024, and keeping
    # >= 2 row tiles whenever n_pad allows it (v7x dual-TensorCore sharding).
    cap = min(1024, n_pad)
    if n_pad >= 256:
        cap = min(cap, n_pad // 2)
    tm = 8
    d = 8
    while d <= cap:
        if n_pad % d == 0:
            tm = d
        d += 8
    return tm, tk


def nodeconv_kernel(a_ref, xhi_ref, xlo_ref, xi_ref, inv_ref,
                    wrel_ref, wroot_ref, b_ref, o_ref, acc_ref):
    """Grid = (row tiles of A/out, reduction tiles over columns of A)."""
    k = pl.program_id(1)

    @pl.when(k == 0)
    def _init():
        acc_ref[...] = jnp.zeros_like(acc_ref)

    # Neighbor aggregation: acc[i] += A[i, k] @ (x_hi[k] + x_lo[k]).
    # Native bf16 x bf16 MXU dots with f32 accumulation (hi/lo split keeps ~f32
    # accuracy of x without an f32 matmul or an in-kernel upcast of A).
    a = a_ref[...]                                                    # bf16 [TM, TK]
    acc_ref[...] += jnp.dot(a, xhi_ref[...], preferred_element_type=jnp.float32)
    acc_ref[...] += jnp.dot(a, xlo_ref[...], preferred_element_type=jnp.float32)

    @pl.when(k == pl.num_programs(1) - 1)
    def _finalize():
        # adj_norm normalization (reciprocal precomputed in the wrapper).
        agg = acc_ref[...] * inv_ref[...]                             # [TM, Dp] f32
        # Concat-free fused finalize: y = agg @ W_rel^T + x @ W_root^T + b
        y = jnp.dot(agg, wrel_ref[...], preferred_element_type=jnp.float32)
        y = y + jnp.dot(xi_ref[...], wroot_ref[...],
                        preferred_element_type=jnp.float32)
        y = y + b_ref[...]
        o_ref[...] = jnp.maximum(y, 0.0).astype(o_ref.dtype)


def build_dense_adjacency(row, col, n_nodes, n_pad):
    """Dense adjacency A[col[e], row[e]] += 1 built directly at the 128-aligned size.

    Contract: bf16 storage is exact only while per-(col, row) duplicate edge
    multiplicity is < 256.  This is an O(N_pad^2) XLA op chain that runs outside
    the kernel -- cache its result across layers/steps when the graph is static.
    """
    del n_nodes  # indices are already < n_nodes <= n_pad
    a = jnp.zeros((n_pad, n_pad), jnp.float32).at[col, row].add(1.0)
    return a.astype(jnp.bfloat16)


def node_conv(x, row, col, w_root, b_root, w_rel, adj_norm=None, a_dense=None):
    """x: [N, D] f32; row/col: [E] int32 edge indices; weights PyTorch-style [out, in]."""
    N, D = x.shape
    Dp = _round_up(D, 128)
    N_pad = _round_up(max(N, 8), 128)
    TM, TK = _choose_tiles(N_pad)

    # ---- glue: padded, kernel-friendly operands (plain JAX; hoistable) ----
    x = jnp.asarray(x, jnp.float32)
    x_pad = jnp.zeros((N_pad, Dp), jnp.float32).at[:N, :D].set(x)
    # hi/lo bf16 split of x for the MXU-native A@x stage.
    x_hi = x_pad.astype(jnp.bfloat16)
    x_lo = (x_pad - x_hi.astype(jnp.float32)).astype(jnp.bfloat16)

    if a_dense is None:
        a_dense = build_dense_adjacency(row, col, N, N_pad)
    assert a_dense.shape == (N_pad, N_pad), "prebuilt A must match padded size"

    if adj_norm is None:
        inv_norm = jnp.ones((N_pad, 1), jnp.float32)
    else:
        # NOTE: zeros in adj_norm produce inf/NaN, matching the PyTorch reference.
        inv = 1.0 / jnp.asarray(adj_norm, jnp.float32).reshape(N, 1)
        inv_norm = jnp.ones((N_pad, 1), jnp.float32).at[:N, :].set(inv)

    # Pre-transposed (and zero-padded) Linear weights; kept as two separate refs so
    # the finalize is two dots with no lane-axis concatenate.
    w_rel_t = jnp.zeros((Dp, Dp), jnp.float32).at[:D, :D].set(
        jnp.asarray(w_rel, jnp.float32).T)
    w_root_t = jnp.zeros((Dp, Dp), jnp.float32).at[:D, :D].set(
        jnp.asarray(w_root, jnp.float32).T)
    b_pad = jnp.zeros((1, Dp), jnp.float32).at[0, :D].set(
        jnp.asarray(b_root, jnp.float32))

    grid = (N_pad // TM, N_pad // TK)
    n_row_tiles = grid[0]
    n_steps = grid[0] * grid[1]
    # Triple-buffer the per-step-changing streams when there are enough steps.
    stream_mode = pl.Buffered(3) if n_steps >= 3 else None

    flops = (2 * 2 * N_pad * N_pad * Dp          # two bf16 dots (hi/lo) for A @ x
             + 2 * 2 * N_pad * Dp * Dp)          # rel + root weight matmuls
    bytes_accessed = (
        2 * N_pad * N_pad                        # A (bf16), streamed once
        + n_row_tiles * N_pad * Dp * (2 + 2)     # x_hi + x_lo (bf16), restreamed per row tile
        + 4 * N_pad * Dp                         # x row tiles (f32), once
        + 4 * N_pad                              # 1/adj_norm
        + 2 * 4 * Dp * Dp + 4 * Dp               # weights + bias
        + 4 * N_pad * Dp)                        # output
    cost = pl.CostEstimate(flops=flops, transcendentals=0,
                           bytes_accessed=bytes_accessed)

    out_pad = pl.pallas_call(
        nodeconv_kernel,
        out_shape=jax.ShapeDtypeStruct((N_pad, Dp), jnp.float32),
        grid_spec=pltpu.PrefetchScalarGridSpec(
            num_scalar_prefetch=0,
            grid=grid,
            in_specs=[
                pl.BlockSpec((TM, TK), lambda i, k: (i, k),
                             pipeline_mode=stream_mode),              # A tile (bf16)
                pl.BlockSpec((TK, Dp), lambda i, k: (k, 0),
                             pipeline_mode=stream_mode),              # x_hi K-stream
                pl.BlockSpec((TK, Dp), lambda i, k: (k, 0),
                             pipeline_mode=stream_mode),              # x_lo K-stream
                pl.BlockSpec((TM, Dp), lambda i, k: (i, 0)),          # x row tile (f32)
                pl.BlockSpec((TM, 1), lambda i, k: (i, 0)),           # 1/adj_norm
                pl.BlockSpec((Dp, Dp), lambda i, k: (0, 0)),          # W_rel^T
                pl.BlockSpec((Dp, Dp), lambda i, k: (0, 0)),          # W_root^T
                pl.BlockSpec((1, Dp), lambda i, k: (0, 0)),           # bias
            ],
            out_specs=pl.BlockSpec((TM, Dp), lambda i, k: (i, 0)),
            scratch_shapes=[pltpu.VMEM((TM, Dp), jnp.float32)],       # agg accumulator
        ),
        compiler_params=pltpu.CompilerParams(
            dimension_semantics=("parallel", "arbitrary"),
            # Sized against v7x's 64 MiB physical VMEM (v5e/v6e have 128 MiB);
            # actual per-step footprint at TM<=1024, TK<=512 is only a few MiB.
            vmem_limit_bytes=48 * 1024 * 1024,
        ),
        cost_estimate=cost,
    )(a_dense, x_hi, x_lo, x_pad, inv_norm, w_rel_t, w_root_t, b_pad)

    return out_pad[:N, :D]


def node_conv_ref(x, row, col, w_root, b_root, w_rel, adj_norm=None):
    """Pure-JAX reference mirroring the PyTorch forward."""
    N = x.shape[0]
    agg = jnp.zeros_like(x).at[col].add(x[row])
    if adj_norm is not None:
        agg = agg / jnp.asarray(adj_norm, jnp.float32).reshape(N, 1)
    rel = agg @ w_rel.T
    root = x @ w_root.T + b_root
    return jax.nn.relu(rel + root)


def _make_case(key, N, D, E):
    kx, kr, kc, kw1, kb1, kw2 = jax.random.split(key, 6)
    x = jax.random.normal(kx, (N, D), jnp.float32)
    row = jax.random.randint(kr, (E,), 0, N, jnp.int32)
    col = jax.random.randint(kc, (E,), 0, N, jnp.int32)
    bound = 1.0 / jnp.sqrt(D)
    w_root = jax.random.uniform(kw1, (D, D), jnp.float32, -bound, bound)
    b_root = jax.random.uniform(kb1, (D,), jnp.float32, -bound, bound)
    w_rel = jax.random.uniform(kw2, (D, D), jnp.float32, -bound, bound)
    return x, row, col, w_root, b_root, w_rel


if __name__ == "__main__":
    key = jax.random.PRNGKey(0)
    k_small, k_med = jax.random.split(key, 2)

    # Small case (module-scale shapes), no normalization: N_pad=128, grid=(1,1).
    N, D, E = 16, 32, 48
    x, row, col, w_root, b_root, w_rel = _make_case(k_small, N, D, E)
    out = jax.block_until_ready(node_conv(x, row, col, w_root, b_root, w_rel))
    ref = node_conv_ref(x, row, col, w_root, b_root, w_rel)
    assert out.shape == (N, D)
    assert jnp.allclose(out, ref, atol=1e-4, rtol=1e-4), "small-case mismatch"

    # Small case with adj_norm (degree normalization, clamped to avoid div-by-zero).
    deg = jnp.maximum(jnp.zeros((N,), jnp.float32).at[col].add(1.0), 1.0)
    out_n = jax.block_until_ready(
        node_conv(x, row, col, w_root, b_root, w_rel, adj_norm=deg))
    ref_n = node_conv_ref(x, row, col, w_root, b_root, w_rel, adj_norm=deg)
    assert jnp.allclose(out_n, ref_n, atol=1e-4, rtol=1e-4), "normalized-case mismatch"

    # Medium case: multi-tile grid with 128-aligned padding (N=520 -> N_pad=640,
    # TM=320, TK=128, grid=(2, 5)) instead of the old N_pad=1024.
    N2, D2, E2 = 520, 32, 1600
    x2, row2, col2, w_root2, b_root2, w_rel2 = _make_case(k_med, N2, D2, E2)
    deg2 = jnp.maximum(jnp.zeros((N2,), jnp.float32).at[col2].add(1.0), 1.0)
    out2 = jax.block_until_ready(
        node_conv(x2, row2, col2, w_root2, b_root2, w_rel2, adj_norm=deg2))
    ref2 = node_conv_ref(x2, row2, col2, w_root2, b_root2, w_rel2, adj_norm=deg2)
    assert out2.shape == (N2, D2)
    assert jnp.allclose(out2, ref2, atol=2e-4, rtol=2e-4), "medium-case mismatch"

    print("KERNEL_OK")
</pallas_src>

<mosaic_0001>
module attributes {stable_mosaic.version = 11 : i64} {
  func.func @nodeconv_kernel(%arg0: i32, %arg1: i32, %arg2: memref<128x128xbf16, #tpu.memory_space<vmem>>, %arg3: memref<128x128xbf16, #tpu.memory_space<vmem>>, %arg4: memref<128x128xbf16, #tpu.memory_space<vmem>>, %arg5: memref<128x128xf32, #tpu.memory_space<vmem>>, %arg6: memref<128x1xf32, #tpu.memory_space<vmem>>, %arg7: memref<128x128xf32, #tpu.memory_space<vmem>>, %arg8: memref<128x128xf32, #tpu.memory_space<vmem>>, %arg9: memref<1x128xf32, #tpu.memory_space<vmem>>, %arg10: memref<128x128xf32, #tpu.memory_space<vmem>>, %arg11: memref<128x128xf32, #tpu.memory_space<vmem>>) attributes {dimension_semantics = [#tpu.dimension_semantics<parallel>, #tpu.dimension_semantics<arbitrary>], iteration_bounds = array<i64: 1, 1>, scalar_prefetch = 0 : i64, scratch_operands = 1 : i64, tpu.core_type = #tpu.core_type<tc>, window_params = [{transform_indices = @transform_0, window_bounds = array<i64: 128, 128>}, {transform_indices = @transform_1, window_bounds = array<i64: 128, 128>}, {transform_indices = @transform_2, window_bounds = array<i64: 128, 128>}, {transform_indices = @transform_3, window_bounds = array<i64: 128, 128>}, {transform_indices = @transform_4, window_bounds = array<i64: 128, 1>}, {pipeline_mode = #tpu.pipeline_mode<synchronous>, transform_indices = @transform_5, window_bounds = array<i64: 128, 128>}, {pipeline_mode = #tpu.pipeline_mode<synchronous>, transform_indices = @transform_6, window_bounds = array<i64: 128, 128>}, {pipeline_mode = #tpu.pipeline_mode<synchronous>, transform_indices = @transform_7, window_bounds = array<i64: 1, 128>}, {transform_indices = @transform_8, window_bounds = array<i64: 128, 128>}]} {
    %c0_i32 = arith.constant 0 : i32
    %0 = arith.cmpi eq, %arg1, %c0_i32 : i32
    %1 = arith.extui %0 : i1 to i32
    %c0_i32_0 = arith.constant 0 : i32
    %2 = arith.cmpi ne, %1, %c0_i32_0 : i32
    scf.if %2 {
      %cst_17 = arith.constant 0.000000e+00 : f32
      %17 = vector.broadcast %cst_17 : f32 to vector<128x128xf32>
      %c0_18 = arith.constant 0 : index
      %c0_19 = arith.constant 0 : index
      %18 = vector.load %arg11[%c0_18, %c0_19] : memref<128x128xf32, #tpu.memory_space<vmem>>, vector<128x128xf32>
      tpu.vector_store %arg11[%c0_18, %c0_19], %17 {strides = array<i32>} : memref<128x128xf32, #tpu.memory_space<vmem>>, vector<128x128xf32>,
    } else {
    }
    %c0 = arith.constant 0 : index
    %c0_1 = arith.constant 0 : index
    %3 = vector.load %arg2[%c0, %c0_1] : memref<128x128xbf16, #tpu.memory_space<vmem>>, vector<128x128xbf16>
    %c0_2 = arith.constant 0 : index
    %c0_3 = arith.constant 0 : index
    %4 = vector.load %arg11[%c0_2, %c0_3] : memref<128x128xf32, #tpu.memory_space<vmem>>, vector<128x128xf32>
    %c0_4 = arith.constant 0 : index
    %c0_5 = arith.constant 0 : index
    %5 = vector.load %arg3[%c0_4, %c0_5] : memref<128x128xbf16, #tpu.memory_space<vmem>>, vector<128x128xbf16>
    %cst = arith.constant dense<0.000000e+00> : vector<128x128xf32>
    %6 = tpu.matmul %3, %5, %cst {dimension_numbers = #tpu.dot_dimension_numbers<[1], [0], [0], [1], [0, 0, 1, 1], [], []>} : vector<128x128xbf16>, vector<128x128xbf16>, vector<128x128xf32> -> vector<128x128xf32>
    %7 = arith.addf %4, %6 : vector<128x128xf32>
    %c0_6 = arith.constant 0 : index
    %c0_7 = arith.constant 0 : index
    %8 = vector.load %arg11[%c0_6, %c0_7] : memref<128x128xf32, #tpu.memory_space<vmem>>, vector<128x128xf32>
    tpu.vector_store %arg11[%c0_6, %c0_7], %7 {strides = array<i32>} : memref<128x128xf32, #tpu.memory_space<vmem>>, vector<128x128xf32>,
    %c0_8 = arith.constant 0 : index
    %c0_9 = arith.constant 0 : index
    %9 = vector.load %arg11[%c0_8, %c0_9] : memref<128x128xf32, #tpu.memory_space<vmem>>, vector<128x128xf32>
    %c0_10 = arith.constant 0 : index
    %c0_11 = arith.constant 0 : index
    %10 = vector.load %arg4[%c0_10, %c0_11] : memref<128x128xbf16, #tpu.memory_space<vmem>>, vector<128x128xbf16>
    %cst_12 = arith.constant dense<0.000000e+00> : vector<128x128xf32>
    %11 = tpu.matmul %3, %10, %cst_12 {dimension_numbers = #tpu.dot_dimension_numbers<[1], [0], [0], [1], [0, 0, 1, 1], [], []>} : vector<128x128xbf16>, vector<128x128xbf16>, vector<128x128xf32> -> vector<128x128xf32>
    %12 = arith.addf %9, %11 : vector<128x128xf32>
    %c0_13 = arith.constant 0 : index
    %c0_14 = arith.constant 0 : index
    %13 = vector.load %arg11[%c0_13, %c0_14] : memref<128x128xf32, #tpu.memory_space<vmem>>, vector<128x128xf32>
    tpu.vector_store %arg11[%c0_13, %c0_14], %12 {strides = array<i32>} : memref<128x128xf32, #tpu.memory_space<vmem>>, vector<128x128xf32>,
    %c0_i32_15 = arith.constant 0 : i32
    %14 = arith.cmpi eq, %arg1, %c0_i32_15 : i32
    %15 = arith.extui %14 : i1 to i32
    %c0_i32_16 = arith.constant 0 : i32
    %16 = arith.cmpi ne, %15, %c0_i32_16 : i32
    scf.if %16 {
      %c0_17 = arith.constant 0 : index
      %c0_18 = arith.constant 0 : index
      %17 = vector.load %arg11[%c0_17, %c0_18] : memref<128x128xf32, #tpu.memory_space<vmem>>, vector<128x128xf32>
      %c0_19 = arith.constant 0 : index
      %c0_20 = arith.constant 0 : index
      %18 = vector.load %arg6[%c0_19, %c0_20] : memref<128x1xf32, #tpu.memory_space<vmem>>, vector<128x1xf32>
      %19 = vector.broadcast %18 : vector<128x1xf32> to vector<128x128xf32>
      %20 = arith.mulf %17, %19 : vector<128x128xf32>
      %c0_21 = arith.constant 0 : index
      %c0_22 = arith.constant 0 : index
      %21 = vector.load %arg7[%c0_21, %c0_22] : memref<128x128xf32, #tpu.memory_space<vmem>>, vector<128x128xf32>
      %cst_23 = arith.constant dense<0.000000e+00> : vector<128x128xf32>
      %22 = tpu.matmul %20, %21, %cst_23 {dimension_numbers = #tpu.dot_dimension_numbers<[1], [0], [0], [1], [0, 0, 1, 1], [], []>} : vector<128x128xf32>, vector<128x128xf32>, vector<128x128xf32> -> vector<128x128xf32>
      %c0_24 = arith.constant 0 : index
      %c0_25 = arith.constant 0 : index
      %23 = vector.load %arg5[%c0_24, %c0_25] : memref<128x128xf32, #tpu.memory_space<vmem>>, vector<128x128xf32>
      %c0_26 = arith.constant 0 : index
      %c0_27 = arith.constant 0 : index
      %24 = vector.load %arg8[%c0_26, %c0_27] : memref<128x128xf32, #tpu.memory_space<vmem>>, vector<128x128xf32>
      %cst_28 = arith.constant dense<0.000000e+00> : vector<128x128xf32>
      %25 = tpu.matmul %23, %24, %cst_28 {dimension_numbers = #tpu.dot_dimension_numbers<[1], [0], [0], [1], [0, 0, 1, 1], [], []>} : vector<128x128xf32>, vector<128x128xf32>, vector<128x128xf32> -> vector<128x128xf32>
      %26 = arith.addf %22, %25 : vector<128x128xf32>
      %c0_29 = arith.constant 0 : index
      %c0_30 = arith.constant 0 : index
      %27 = vector.load %arg9[%c0_29, %c0_30] : memref<1x128xf32, #tpu.memory_space<vmem>>, vector<1x128xf32>
      %28 = vector.broadcast %27 : vector<1x128xf32> to vector<128x128xf32>
      %29 = arith.addf %26, %28 : vector<128x128xf32>
      %cst_31 = arith.constant 0.000000e+00 : f32
      %30 = vector.broadcast %cst_31 : f32 to vector<128x128xf32>
      %31 = arith.maximumf %29, %30 : vector<128x128xf32>
      %c0_32 = arith.constant 0 : index
      %c0_33 = arith.constant 0 : index
      %32 = vector.load %arg10[%c0_32, %c0_33] : memref<128x128xf32, #tpu.memory_space<vmem>>, vector<128x128xf32>
      tpu.vector_store %arg10[%c0_32, %c0_33], %31 {strides = array<i32>} : memref<128x128xf32, #tpu.memory_space<vmem>>, vector<128x128xf32>,
    } else {
    }
    return
  }
  func.func @transform_0(%arg0: i32, %arg1: i32) -> (i32, i32) {
    %c0_i32 = arith.constant 0 : i32
    return %arg0, %arg1 : i32, i32
  }
  func.func @transform_1(%arg0: i32, %arg1: i32) -> (i32, i32) {
    %c0_i32 = arith.constant 0 : i32
    %c0_i32_0 = arith.constant 0 : i32
    return %arg1, %c0_i32 : i32, i32
  }
  func.func @transform_2(%arg0: i32, %arg1: i32) -> (i32, i32) {
    %c0_i32 = arith.constant 0 : i32
    %c0_i32_0 = arith.constant 0 : i32
    return %arg1, %c0_i32 : i32, i32
  }
  func.func @transform_3(%arg0: i32, %arg1: i32) -> (i32, i32) {
    %c0_i32 = arith.constant 0 : i32
    %c0_i32_0 = arith.constant 0 : i32
    return %arg0, %c0_i32 : i32, i32
  }
  func.func @transform_4(%arg0: i32, %arg1: i32) -> (i32, i32) {
    %c0_i32 = arith.constant 0 : i32
    %c0_i32_0 = arith.constant 0 : i32
    return %arg0, %c0_i32 : i32, i32
  }
  func.func @transform_5(%arg0: i32, %arg1: i32) -> (i32, i32) {
    %c0_i32 = arith.constant 0 : i32
    %c0_i32_0 = arith.constant 0 : i32
    %c0_i32_1 = arith.constant 0 : i32
    return %c0_i32, %c0_i32_0 : i32, i32
  }
  func.func @transform_6(%arg0: i32, %arg1: i32) -> (i32, i32) {
    %c0_i32 = arith.constant 0 : i32
    %c0_i32_0 = arith.constant 0 : i32
    %c0_i32_1 = arith.constant 0 : i32
    return %c0_i32, %c0_i32_0 : i32, i32
  }
  func.func @transform_7(%arg0: i32, %arg1: i32) -> (i32, i32) {
    %c0_i32 = arith.constant 0 : i32
    %c0_i32_0 = arith.constant 0 : i32
    %c0_i32_1 = arith.constant 0 : i32
    return %c0_i32, %c0_i32_0 : i32, i32
  }
  func.func @transform_8(%arg0: i32, %arg1: i32) -> (i32, i32) {
    %c0_i32 = arith.constant 0 : i32
    %c0_i32_0 = arith.constant 0 : i32
    return %arg0, %c0_i32 : i32, i32
  }
}

</mosaic_0001>

<bundles_post_ra>
// kernel: tpu_custom_call.1
= control target key start
LH: loop header
LB: loop body
LE: loop exit
PB: predicated region body
PF: predicated region fallthrough
CT: control target
= control target key end

     0   :  { %13 = vsyncpa [#allocation4], 0  ;;  %s1815_s0 = inlined_call_operand.hbm [shape: bf16[128,128], index: 0, kind: input, shape index: {}]   ;;  %s1816_s1 = inlined_call_operand.hbm [shape: bf16[128,128], index: 1, kind: input, shape index: {}]   ;;  %s1817_s2 = inlined_call_operand.hbm [shape: bf16[128,128], index: 2, kind: input, shape index: {}]   ;;  %s1818_s3 = inlined_call_operand.vmem [shape: f32[128,128], index: 3, kind: input, shape index: {}]   ;;  %s1819_s4 = inlined_call_operand.vmem [shape: f32[128,1], index: 4, kind: input, shape index: {}]   ;;  %s1820_s5 = inlined_call_operand.hbm [shape: f32[128,128], index: 5, kind: input, shape index: {}]   ;;  %s1821_s6 = inlined_call_operand.hbm [shape: f32[128,128], index: 6, kind: input, shape index: {}]   ;;  %s1822_s7 = inlined_call_operand.vmem [shape: f32[1,128], index: 7, kind: input, shape index: {}]   ;;  %s1823_s8 = inlined_call_operand.hbm [shape: f32[128,128], index: 8, kind: output, shape index: {}]  }
   0x1   :  { %14 = vsyncpa [#allocation7], 0 }
   0x2   :  { %15 = vsyncpa [#allocation10], 0 }
   0x3   :  { %16 = vsyncpa [#allocation5], 0  ;;  %s1606_s27 = smov [#allocation6]   ;;  %s1607_s29 = smov [#allocation9]  }
   0x4   :  { %s34_s28 = sshll.u32 %s1606_s27, 4  ;;  %s62_s30 = sshll.u32 %s1607_s29, 4  ;;  %s35_s28 = int_to_ptr.vmem [resolvable:$true] %s34_s28  ;;  %s63_s30 = int_to_ptr.vmem [resolvable:$true] %s62_s30 }
   0x5   :  { %s1486_s9 = scalar_lea.vmem %s35_s28, 1024  ;;  %p1491_p1 = scmp.lt.s32.totalorder %s35_s28, %s35_s28 }
   0x6   :  { %p1487_p0 = scmp.ne.s32.totalorder %s35_s28, %s1486_s9  ;;  %p1492_p2 = scmp.lt.s32.totalorder %s1486_s9, %s1486_s9 }
   0x8   :  { %p1493_p3 = por %p1492_p2, %p1491_p1 }
   0xa   :  { %p1494_p4 = pnand %p1493_p3, %p1487_p0 }
   0xc   :  { %1497 = shalt.err (!%p1494_p4)
}
   0xd   :  { %s1608_s10 = smov 64   ;;  %s1609_s11 = smov 4  }
   0xe   :  { %40 = dma.hbm_to_vmem [thread:$0]  %s1816_s1, 1024, %s35_s28, [#allocation7], %s1608_s10, %s1608_s10, %s1609_s11  }
   0xf   :  { %s1506_s14 = scalar_lea.vmem %s63_s30, 2048  ;;  %p1511_p6 = scmp.lt.s32.totalorder %s63_s30, %s63_s30 }
  0x10   :  { %p1507_p5 = scmp.ne.s32.totalorder %s63_s30, %s1506_s14  ;;  %p1512_p7 = scmp.lt.s32.totalorder %s1506_s14, %s1506_s14 }
  0x12   :  { %p1513_p8 = por %p1512_p7, %p1511_p6 }
  0x14   :  { %p1514_p9 = pnand %p1513_p8, %p1507_p5 }
  0x16   :  { %1517 = shalt.err (!%p1514_p9)
}
  0x17   :  { %s1610_s15 = smov 128   ;;  %s1611_s16 = smov 8  }
  0x18   :  { %68 = dma.hbm_to_vmem [thread:$0]  %s1820_s5, 2048, %s63_s30, [#allocation10], %s1610_s15, %s1610_s15, %s1611_s16  }
  0x19   :  { %s1612_s19 = smov [#allocation3]   ;;  %s1613_s21 = smov [#allocation8]  }
  0x1a   :  { %s22_s20 = sshll.u32 %s1612_s19, 4  ;;  %s46_s1 = sshll.u32 %s1613_s21, 4  ;;  %s23_s20 = int_to_ptr.vmem [resolvable:$true] %s22_s20  ;;  %s47_s1 = int_to_ptr.vmem [resolvable:$true] %s46_s1 }
  0x1b   :  { %s1526_s22 = scalar_lea.vmem %s23_s20, 1024  ;;  %p1531_p11 = scmp.lt.s32.totalorder %s23_s20, %s23_s20 }
  0x1c   :  { %p1527_p10 = scmp.ne.s32.totalorder %s23_s20, %s1526_s22  ;;  %p1532_p12 = scmp.lt.s32.totalorder %s1526_s22, %s1526_s22 }
  0x1e   :  { %p1533_p13 = por %p1532_p12, %p1531_p11 }
  0x20   :  { %p1534_p0 = pnand %p1533_p13, %p1527_p10 }
  0x22   :  { %1537 = shalt.err (!%p1534_p0)
}
  0x23   :  { %28 = dma.hbm_to_vmem [thread:$0]  %s1815_s0, 1024, %s23_s20, [#allocation4], %s1608_s10, %s1608_s10, %s1609_s11  }
  0x24   :  { %s1546_s5 = scalar_lea.vmem %s47_s1, 1024  ;;  %p1551_p2 = scmp.lt.s32.totalorder %s47_s1, %s47_s1 }
  0x25   :  { %p1547_p1 = scmp.ne.s32.totalorder %s47_s1, %s1546_s5  ;;  %p1552_p3 = scmp.lt.s32.totalorder %s1546_s5, %s1546_s5 }
  0x27   :  { %p1553_p4 = por %p1552_p3, %p1551_p2 }
  0x29   :  { %p1554_p5 = pnand %p1553_p4, %p1547_p1 }
  0x2b   :  { %1557 = shalt.err (!%p1554_p5)
}
  0x2c   :  { %52 = dma.hbm_to_vmem [thread:$0]  %s1817_s2, 1024, %s47_s1, [#allocation7], %s1608_s10, %s1608_s10, %s1609_s11  }
  0x2d   :  { %s1614_s27 = smov [#allocation11]  }
  0x2e   :  { %s74_s28 = sshll.u32 %s1614_s27, 4  ;;  %s75_s28 = int_to_ptr.vmem [resolvable:$true] %s74_s28 }
  0x2f   :  { %s1566_s29 = scalar_lea.vmem %s75_s28, 2048  ;;  %p1571_p7 = scmp.lt.s32.totalorder %s75_s28, %s75_s28 }
  0x30   :  { %p1567_p6 = scmp.ne.s32.totalorder %s75_s28, %s1566_s29  ;;  %p1572_p8 = scmp.lt.s32.totalorder %s1566_s29, %s1566_s29 }
  0x32   :  { %p1573_p9 = por %p1572_p8, %p1571_p7 }
  0x34   :  { %p1574_p10 = pnand %p1573_p9, %p1567_p6 }
  0x36   :  { %1577 = shalt.err (!%p1574_p10)
}
  0x37   :  { %80 = dma.hbm_to_vmem [thread:$0]  %s1821_s6, 2048, %s75_s28, [#allocation10], %s1610_s15, %s1610_s15, %s1611_s16  }
  0x38   :  { %1598 = dma.done.wait [#allocation4], 1024  }
  0x39   :  { %1599 = vsyncadd [#allocation4], 4294966272 }
  0x3a   :  { %1600 = dma.done.wait [#allocation7], 2048  }
  0x3b   :  { %1601 = vsyncadd [#allocation7], 4294965248 }
  0x3c   :  { %1602 = dma.done.wait [#allocation10], 4096  }
  0x3d   :  { %1603 = vsyncadd [#allocation10], 4294963200  ;;  %v1615_v0 = vmov 0   ;;  %v1454_v1 = vld [vmem:[#allocation6 + $0x38] sm:$0xff]   ;;  %v1456_v3 = vld [vmem:[#allocation6 + $0x30] sm:$0xff]  }
  0x3e   :  { %1452 = vset.pattern.permute.xlu0 %v1615_v0  ;;  %1453 = vset.pattern.permute.xlu1 %v1615_v0  ;;  %v1455_v2 = vld [vmem:[#allocation8 + $0x38] sm:$0xff]   ;;  %v1457_v4 = vld [vmem:[#allocation8 + $0x30] sm:$0xff]   ;;  %v1458_v5 = vld [vmem:[#allocation6 + $0x28] sm:$0xff]  }
  0x3f   :  { %1265 = vmatprep.subr.bf16.mxu0 %v1454_v1  ;;  %1297 = vmatprep.subr.bf16.mxu1 %v1455_v2  ;;  %v1459_v6 = vld [vmem:[#allocation8 + $0x28] sm:$0xff]   ;;  %v1460_v7 = vld [vmem:[#allocation6 + $0x20] sm:$0xff]   ;;  %v1462_v9 = vld [vmem:[#allocation6 + $0x18] sm:$0xff]  }
  0x40   :  { %1266 = vmatpush3.bf16.msra.mxu0 %v1454_v1  ;;  %1298 = vmatpush3.bf16.msra.mxu1 %v1455_v2  ;;  %v1461_v8 = vld [vmem:[#allocation8 + $0x20] sm:$0xff]   ;;  %v1463_v10 = vld [vmem:[#allocation8 + $0x18] sm:$0xff]   ;;  %v1464_v11 = vld [vmem:[#allocation6 + $0x10] sm:$0xff]  }
  0x41   :  { %1267 = vmatprep.subr.bf16.mxu0 %v1456_v3  ;;  %1299 = vmatprep.subr.bf16.mxu1 %v1457_v4  ;;  %v1470_v12 = vld [vmem:[#allocation3] sm:$0xff]   ;;  %v1465_v13 = vld [vmem:[#allocation8 + $0x10] sm:$0xff]   ;;  %v1466_v14 = vld [vmem:[#allocation6 + $0x8] sm:$0xff]  }
  0x42   :  { %1281 = vmatprep.mubr.bf16.mxu0 %v1470_v12  ;;  %1313 = vmatprep.mubr.bf16.mxu1 %v1470_v12  ;;  %v1467_v15 = vld [vmem:[#allocation8 + $0x8] sm:$0xff]   ;;  %v1468_v16 = vld [vmem:[#allocation6] sm:$0xff]   ;;  %v622_v18 = vld [vmem:[%s1819_s4 + $0x10] sm:$0xff] }
  0x43   :  { %v620_v17 = vld [vmem:[%s1819_s4] sm:$0xff]  ;;  %648 = vperm.xlu1 %1453, %v622_v18   ;;  %v621_v20 = vld [vmem:[%s1819_s4 + $0x8] sm:$0xff]  ;;  %v623_v21 = vld [vmem:[%s1819_s4 + $0x18] sm:$0xff] }
  0x44   :  { %1268 = vmatpush3.bf16.msra.mxu0 %v1456_v3  ;;  %1300 = vmatpush3.bf16.msra.mxu1 %v1457_v4  ;;  %v1469_v19 = vld [vmem:[#allocation8] sm:$0xff]   ;;  %v779_v22 = vld [vmem:[#allocation11 + $0x78] sm:$0xff]  ;;  %v1471_v23 = vld [vmem:[#allocation3 + $0x8] sm:$0xff]  }
  0x45   :  { %1269 = vmatprep.subr.bf16.mxu0 %v1458_v5  ;;  %1301 = vmatprep.subr.bf16.mxu1 %v1459_v6  ;;  %v624_v24 = vld [vmem:[%s1819_s4 + $0x20] sm:$0xff]  ;;  %v747_v25 = vld [vmem:[#allocation9 + $0x78] sm:$0xff]  ;;  %v1472_v26 = vld [vmem:[#allocation3 + $0x10] sm:$0xff]  }
  0x46   :  { %638 = vperm.xlu0 %1452, %v620_v17   ;;  %v625_v27 = vld [vmem:[%s1819_s4 + $0x28] sm:$0xff]  ;;  %v626_v28 = vld [vmem:[%s1819_s4 + $0x30] sm:$0xff]  ;;  %v627_v30 = vld [vmem:[%s1819_s4 + $0x38] sm:$0xff] }
  0x47   :  { %653 = vperm.xlu1 %1453, %v623_v21   ;;  %v778_v29 = vld [vmem:[#allocation11 + $0x70] sm:$0xff]  ;;  %v777_v32 = vld [vmem:[#allocation11 + $0x68] sm:$0xff]  ;;  %v1473_v33 = vld [vmem:[#allocation3 + $0x18] sm:$0xff]  }
  0x48   :  { %1270 = vmatpush3.bf16.msra.mxu0 %v1458_v5  ;;  %1302 = vmatpush3.bf16.msra.mxu1 %v1459_v6  ;;  %v746_v31 = vld [vmem:[#allocation9 + $0x70] sm:$0xff]  ;;  %v628_v34 = vld [vmem:[%s1819_s4 + $0x40] sm:$0xff]  ;;  %v629_v36 = vld [vmem:[%s1819_s4 + $0x48] sm:$0xff] }
  0x49   :  { %1271 = vmatprep.subr.bf16.mxu0 %v1460_v7  ;;  %1303 = vmatprep.subr.bf16.mxu1 %v1461_v8  ;;  %v1474_v35 = vld [vmem:[#allocation3 + $0x20] sm:$0xff]   ;;  %v745_v37 = vld [vmem:[#allocation9 + $0x68] sm:$0xff]  ;;  %v630_v38 = vld [vmem:[%s1819_s4 + $0x50] sm:$0xff] }
  0x4a   :  { %643 = vperm.xlu0 %1452, %v621_v20   ;;  %v776_v39 = vld [vmem:[#allocation11 + $0x60] sm:$0xff]  ;;  %v631_v40 = vld [vmem:[%s1819_s4 + $0x58] sm:$0xff]  ;;  %v1475_v43 = vld [vmem:[#allocation3 + $0x28] sm:$0xff]  }
  0x4b   :  { %663 = vperm.xlu1 %1453, %v625_v27   ;;  %v744_v41 = vld [vmem:[#allocation9 + $0x60] sm:$0xff]  ;;  %v775_v42 = vld [vmem:[#allocation11 + $0x58] sm:$0xff]  ;;  %v1476_v45 = vld [vmem:[#allocation3 + $0x30] sm:$0xff]  }
  0x4c   :  { %1272 = vmatpush3.bf16.msra.mxu0 %v1460_v7  ;;  %1304 = vmatpush3.bf16.msra.mxu1 %v1461_v8  ;;  %v632_v44 = vld [vmem:[%s1819_s4 + $0x60] sm:$0xff]  ;;  %v633_v46 = vld [vmem:[%s1819_s4 + $0x68] sm:$0xff]  ;;  %v743_v47 = vld [vmem:[#allocation9 + $0x58] sm:$0xff] }
  0x4d   :  { %1273 = vmatprep.subr.bf16.mxu0 %v1462_v9  ;;  %1305 = vmatprep.subr.bf16.mxu1 %v1463_v10  ;;  %v634_v48 = vld [vmem:[%s1819_s4 + $0x70] sm:$0xff]  ;;  %v635_v50 = vld [vmem:[%s1819_s4 + $0x78] sm:$0xff]  ;;  %v773_v52 = vld [vmem:[#allocation11 + $0x48] sm:$0xff] }
  0x4e   :  { %658 = vperm.xlu0 %1452, %v624_v24   ;;  %v774_v49 = vld [vmem:[#allocation11 + $0x50] sm:$0xff]  ;;  %v1477_v53 = vld [vmem:[#allocation3 + $0x38] sm:$0xff]   ;;  %v741_v54 = vld [vmem:[#allocation9 + $0x48] sm:$0xff] }
  0x4f   :  { %673 = vperm.xlu1 %1453, %v627_v30   ;;  %v742_v51 = vld [vmem:[#allocation9 + $0x50] sm:$0xff]  ;;  %v772_v55 = vld [vmem:[#allocation11 + $0x40] sm:$0xff]  ;;  %v771_v56 = vld [vmem:[#allocation11 + $0x38] sm:$0xff] }
  0x50   :  { %1274 = vmatpush3.bf16.msra.mxu0 %v1462_v9  ;;  %1306 = vmatpush3.bf16.msra.mxu1 %v1463_v10  ;;  %v740_v57 = vld [vmem:[#allocation9 + $0x40] sm:$0xff]  ;;  %v770_v58 = vld [vmem:[#allocation11 + $0x30] sm:$0xff]  ;;  %v739_v59 = vld [vmem:[#allocation9 + $0x38] sm:$0xff] }
  0x51   :  { %1275 = vmatprep.subr.bf16.mxu0 %v1464_v11  ;;  %1307 = vmatprep.subr.bf16.mxu1 %v1465_v13  ;;  %v769_v60 = vld [vmem:[#allocation11 + $0x28] sm:$0xff]  ;;  %v738_v61 = vld [vmem:[#allocation9 + $0x30] sm:$0xff]  ;;  %v768_v62 = vld [vmem:[#allocation11 + $0x20] sm:$0xff] }
  0x52   :  { %668 = vperm.xlu0 %1452, %v626_v28   ;;  %v737_v63 = vld [vmem:[#allocation9 + $0x28] sm:$0xff]  ;;  %v736_v0 = vld [vmem:[#allocation9 + $0x20] sm:$0xff]  ;;  %v767_v1 = vld [vmem:[#allocation11 + $0x18] sm:$0xff] }
  0x53   :  { %683 = vperm.xlu1 %1453, %v629_v36   ;;  %v735_v2 = vld [vmem:[#allocation9 + $0x18] sm:$0xff]  ;;  %v766_v3 = vld [vmem:[#allocation11 + $0x10] sm:$0xff]  ;;  %v765_v5 = vld [vmem:[#allocation11 + $0x8] sm:$0xff] }
  0x54   :  { %1276 = vmatpush3.bf16.msra.mxu0 %v1464_v11  ;;  %1308 = vmatpush3.bf16.msra.mxu1 %v1465_v13  ;;  %v734_v4 = vld [vmem:[#allocation9 + $0x10] sm:$0xff]  ;;  %v733_v6 = vld [vmem:[#allocation9 + $0x8] sm:$0xff]  ;;  %v764_v7 = vld [vmem:[#allocation11] sm:$0xff] }
  0x55   :  { %1277 = vmatprep.subr.bf16.mxu0 %v1466_v14  ;;  %1309 = vmatprep.subr.bf16.mxu1 %v1467_v15  ;;  %v748_v8 = vld [vmem:[%s1818_s3] sm:$0xff]  ;;  %v749_v10 = vld [vmem:[%s1818_s3 + $0x8] sm:$0xff]  ;;  %v750_v11 = vld [vmem:[%s1818_s3 + $0x10] sm:$0xff] }
  0x56   :  { %678 = vperm.xlu0 %1452, %v628_v34   ;;  %v732_v9 = vld [vmem:[#allocation9] sm:$0xff]  ;;  %v751_v12 = vld [vmem:[%s1818_s3 + $0x18] sm:$0xff]  ;;  %v757_v18 = vld [vmem:[%s1818_s3 + $0x48] sm:$0xff] }
  0x57   :  { %693 = vperm.xlu1 %1453, %v631_v40   ;;  %v752_v13 = vld [vmem:[%s1818_s3 + $0x20] sm:$0xff]  ;;  %v759_v20 = vld [vmem:[%s1818_s3 + $0x58] sm:$0xff] }
  0x58   :  { %1278 = vmatpush3.bf16.msra.mxu0 %v1466_v14  ;;  %1310 = vmatpush3.bf16.msra.mxu1 %v1467_v15  ;;  %v753_v14 = vld [vmem:[%s1818_s3 + $0x28] sm:$0xff]  ;;  %v754_v15 = vld [vmem:[%s1818_s3 + $0x30] sm:$0xff]  ;;  %v756_v17 = vld [vmem:[%s1818_s3 + $0x40] sm:$0xff] }
  0x59   :  { %1279 = vmatprep.subr.bf16.mxu0 %v1468_v16  ;;  %1311 = vmatprep.subr.bf16.mxu1 %v1469_v19  ;;  %v760_v21 = vld [vmem:[%s1818_s3 + $0x60] sm:$0xff]  ;;  %v763_v24 = vld [vmem:[%s1818_s3 + $0x78] sm:$0xff] }
  0x5a   :  { %688 = vperm.xlu0 %1452, %v630_v38  }
  0x5b   :  { %703 = vperm.xlu1 %1453, %v633_v46  }
  0x5c   :  { %1280 = vmatpush3.bf16.msra.mxu0 %v1468_v16  ;;  %1312 = vmatpush3.bf16.msra.mxu1 %v1469_v19  ;;  %v755_v16 = vld [vmem:[%s1818_s3 + $0x38] sm:$0xff]  ;;  %v758_v19 = vld [vmem:[%s1818_s3 + $0x50] sm:$0xff] }
  0x5d   :  { %1329 = vmatprep.subr.mxu0 %v779_v22  ;;  %1385 = vmatprep.subr.mxu1 %v747_v25 }
  0x5e   :  { %698 = vperm.xlu0 %1452, %v632_v44  }
  0x5f   :  { %1282 = vmatmul.mubr.bf16.vlgmr.msra.gmra.mxu0 %v1471_v23  ;;  %1314 = vmatmul.mubr.bf16.vlgmr.msra.gmra.mxu1 %v1471_v23  ;;  %v762_v23 = vld [vmem:[%s1818_s3 + $0x70] sm:$0xff] }
  0x60   :  { %1285 = vmatprep.mubr.bf16.mxu0 %v1472_v26  ;;  %1317 = vmatprep.mubr.bf16.mxu1 %v1472_v26 }
  0x61   :  { %1330 = vmatpush3.msra.mxu0 %v779_v22  ;;  %1386 = vmatpush3.msra.mxu1 %v747_v25  ;;  %v761_v22 = vld [vmem:[%s1818_s3 + $0x68] sm:$0xff] }
  0x62   :  { %1331 = vmatprep.subr.mxu0 %v778_v29  ;;  %1387 = vmatprep.subr.mxu1 %v746_v31 }
  0x63   :  { %1332 = vmatpush3.msra.mxu0 %v778_v29  ;;  %1388 = vmatpush3.msra.mxu1 %v746_v31 }
  0x64   :  { %1333 = vmatprep.subr.mxu0 %v777_v32  ;;  %1389 = vmatprep.subr.mxu1 %v745_v37 }
  0x65   :  { %1334 = vmatpush3.msra.mxu0 %v777_v32  ;;  %1390 = vmatpush3.msra.mxu1 %v745_v37 }
  0x66   :  { %1335 = vmatprep.subr.mxu0 %v776_v39  ;;  %1391 = vmatprep.subr.mxu1 %v744_v41 }
  0x67   :  { %1286 = vmatmul.mubr.bf16.gmra.mxu0 %v1473_v33  ;;  %1318 = vmatmul.mubr.bf16.gmra.mxu1 %v1473_v33 }
  0x68   :  { %1289 = vmatprep.mubr.bf16.mxu0 %v1474_v35  ;;  %1321 = vmatprep.mubr.bf16.mxu1 %v1474_v35 }
  0x69   :  { %1336 = vmatpush3.msra.mxu0 %v776_v39  ;;  %1392 = vmatpush3.msra.mxu1 %v744_v41 }
  0x6a   :  { %1337 = vmatprep.subr.mxu0 %v775_v42  ;;  %1393 = vmatprep.subr.mxu1 %v743_v47 }
  0x6b   :  { %1338 = vmatpush3.msra.mxu0 %v775_v42  ;;  %708 = vperm.xlu0 %1452, %v634_v48  }
  0x6c   :  { %1339 = vmatprep.subr.mxu0 %v774_v49  ;;  %713 = vperm.xlu1 %1453, %v635_v50  }
  0x6d   :  { %1394 = vmatpush3.msra.mxu1 %v743_v47  ;;  %1340 = vmatpush3.msra.mxu0 %v774_v49 }
  0x6e   :  { %1395 = vmatprep.subr.mxu1 %v742_v51  ;;  %1341 = vmatprep.subr.mxu0 %v773_v52 }
  0x6f   :  { %1290 = vmatmul.mubr.bf16.gmra.mxu0 %v1475_v43  ;;  %1322 = vmatmul.mubr.bf16.gmra.mxu1 %v1475_v43 }
  0x70   :  { %1293 = vmatprep.mubr.bf16.mxu0 %v1476_v45  ;;  %1325 = vmatprep.mubr.bf16.mxu1 %v1476_v45 }
  0x71   :  { %1396 = vmatpush3.msra.mxu1 %v742_v51  ;;  %1342 = vmatpush3.msra.mxu0 %v773_v52 }
  0x72   :  { %1397 = vmatprep.subr.mxu1 %v741_v54  ;;  %1343 = vmatprep.subr.mxu0 %v772_v55 }
  0x73   :  { %1344 = vmatpush3.msra.mxu0 %v772_v55  ;;  %1398 = vmatpush3.msra.mxu1 %v741_v54 }
  0x74   :  { %1345 = vmatprep.subr.mxu0 %v771_v56  ;;  %1399 = vmatprep.subr.mxu1 %v740_v57 }
  0x75   :  { %1346 = vmatpush3.msra.mxu0 %v771_v56  ;;  %1400 = vmatpush3.msra.mxu1 %v740_v57 }
  0x76   :  { %1347 = vmatprep.subr.mxu0 %v770_v58  ;;  %1401 = vmatprep.subr.mxu1 %v739_v59 }
  0x77   :  { %1294 = vmatmul.mubr.bf16.gmra.mxu0 %v1477_v53  ;;  %1326 = vmatmul.mubr.bf16.gmra.mxu1 %v1477_v53 }
  0x78   :  { %1348 = vmatpush3.msra.mxu0 %v770_v58  ;;  %1402 = vmatpush3.msra.mxu1 %v739_v59 }
  0x79   :  { %1349 = vmatprep.subr.mxu0 %v769_v60  ;;  %1403 = vmatprep.subr.mxu1 %v738_v61 }
  0x7a   :  { %1350 = vmatpush3.msra.mxu0 %v769_v60  ;;  %1404 = vmatpush3.msra.mxu1 %v738_v61 }
  0x7b   :  { %1351 = vmatprep.subr.mxu0 %v768_v62  ;;  %1405 = vmatprep.subr.mxu1 %v737_v63 }
  0x7c   :  { %1352 = vmatpush3.msra.mxu0 %v768_v62  ;;  %1406 = vmatpush3.msra.mxu1 %v737_v63 }
  0x7d   :  { %1407 = vmatprep.subr.mxu1 %v736_v0  ;;  %1353 = vmatprep.subr.mxu0 %v767_v1 }
  0x7e   :  { %1408 = vmatpush3.msra.mxu1 %v736_v0  ;;  %1354 = vmatpush3.msra.mxu0 %v767_v1 }
  0x7f   :  { %1409 = vmatprep.subr.mxu1 %v735_v2  ;;  %1355 = vmatprep.subr.mxu0 %v766_v3 }
  0x80   :  { %1410 = vmatpush3.msra.mxu1 %v735_v2  ;;  %1356 = vmatpush3.msra.mxu0 %v766_v3 }
  0x81   :  { %1411 = vmatprep.subr.mxu1 %v734_v4  ;;  %1357 = vmatprep.subr.mxu0 %v765_v5 }
  0x82   :  { %1412 = vmatpush3.msra.mxu1 %v734_v4  ;;  %1358 = vmatpush3.msra.mxu0 %v765_v5 }
  0x83   :  { %1413 = vmatprep.subr.mxu1 %v733_v6  ;;  %1359 = vmatprep.subr.mxu0 %v764_v7 }
  0x84   :  { %1414 = vmatpush3.msra.mxu1 %v733_v6  ;;  %1360 = vmatpush3.msra.mxu0 %v764_v7 }
  0x85   :  { %1361 = vmatprep.mubr.f32.mxu0 %v748_v8  ;;  %1415 = vmatprep.subr.mxu1 %v732_v9 }
  0x86   :  { %1362 = vmatmul.mubr.f32.vlgmr.msra.gmra.mxu0 %v749_v10  ;;  %1416 = vmatpush3.msra.mxu1 %v732_v9 }
  0x87   :  { %1364 = vmatprep.mubr.f32.mxu0 %v750_v11 }
  0x8a   :  { %1365 = vmatmul.mubr.f32.gmra.mxu0 %v751_v12 }
  0x8b   :  { %1367 = vmatprep.mubr.f32.mxu0 %v752_v13 }
  0x8e   :  { %1368 = vmatmul.mubr.f32.gmra.mxu0 %v753_v14 }
  0x8f   :  { %1370 = vmatprep.mubr.f32.mxu0 %v754_v15 }
  0x92   :  { %1371 = vmatmul.mubr.f32.gmra.mxu0 %v755_v16 }
  0x93   :  { %1373 = vmatprep.mubr.f32.mxu0 %v756_v17 }
  0x96   :  { %1374 = vmatmul.mubr.f32.gmra.mxu0 %v757_v18 }
  0x97   :  { %1376 = vmatprep.mubr.f32.mxu0 %v758_v19 }
  0x9a   :  { %1377 = vmatmul.mubr.f32.gmra.mxu0 %v759_v20 }
  0x9b   :  { %1379 = vmatprep.mubr.f32.mxu0 %v760_v21 }
  0x9e   :  { %1380 = vmatmul.mubr.f32.gmra.mxu0 %v761_v22 }
  0x9f   :  { %1382 = vmatprep.mubr.f32.mxu0 %v762_v23 }
  0xa2   :  { %1383 = vmatmul.mubr.f32.gmra.mxu0 %v763_v24 }
  0xbe   :  { %v649_v26 = vpop.permute.xlu1 %648 }
  0xc1   :  { %v639_v25 = vpop.permute.xlu0 %638 }
  0xc2   :  { %v654_v29 = vpop.permute.xlu1 %653 }
  0xc5   :  { %v644_v27 = vpop.permute.xlu0 %643 }
  0xc6   :  { %v664_v39 = vpop.permute.xlu1 %663 }
  0xc9   :  { %v659_v33 = vpop.permute.xlu0 %658 }
  0xca   :  { %v674_v53 = vpop.permute.xlu1 %673 }
  0xcd   :  { %v669_v45 = vpop.permute.xlu0 %668 }
  0xce   :  { %v684_v3 = vpop.permute.xlu1 %683 }
  0xd1   :  { %v679_v60 = vpop.permute.xlu0 %678 }
  0xd2   :  { %v694_v17 = vpop.permute.xlu1 %693 }
  0xd5   :  { %v689_v9 = vpop.permute.xlu0 %688 }
  0xd9   :  { %v699_v24 = vpop.permute.xlu0 %698 }
 0x11f   :  { %v1283_v28 = vpop.f32.mrf.mxu0  ;;  %v1315_v30 = vpop.f32.mrf.mxu1 }
 0x120   :  { %v571_v40 = vadd.f32 %v1315_v30, %v1283_v28 }
 0x121   :  { %v297_v31 = vpop.f32.mrf.mxu0  ;;  %v506_v32 = vpop.f32.mrf.mxu1 }
 0x122   :  { %v569_v34 = vadd.f32 %v506_v32, %v297_v31  ;;  %v718_v49 = vmul.f32 %v649_v26, %v571_v40  ;;  %v704_v31 = vpop.permute.xlu1 %703 }
 0x123   :  { %v1284_v35 = vpop.f32.mrf.mxu0  ;;  %v1316_v36 = vpop.f32.mrf.mxu1 }
 0x124   :  { %v716_v37 = vmul.f32 %v639_v25, %v569_v34  ;;  %v572_v46 = vadd.f32 %v1316_v36, %v1284_v35  ;;  %v709_v35 = vpop.permute.xlu0 %708 }
 0x125   :  { %v300_v38 = vpop.f32.mrf.mxu0  ;;  %v509_v41 = vpop.f32.mrf.mxu1 }
 0x126   :  { %v570_v42 = vadd.f32 %v509_v41, %v300_v38  ;;  %1417 = vmatprep.mubr.f32.mxu1 %v716_v37  ;;  %v719_v55 = vmul.f32 %v654_v29, %v572_v46 }
 0x127   :  { %v1287_v43 = vpop.f32.mrf.mxu0  ;;  %v1319_v44 = vpop.f32.mrf.mxu1 }
 0x128   :  { %v717_v47 = vmul.f32 %v644_v27, %v570_v42  ;;  %v575_v58 = vadd.f32 %v1319_v44, %v1287_v43 }
 0x129   :  { %v313_v48 = vpop.f32.mrf.mxu0  ;;  %v522_v50 = vpop.f32.mrf.mxu1 }
 0x12a   :  { %v573_v51 = vadd.f32 %v522_v50, %v313_v48  ;;  %1418 = vmatmul.mubr.f32.vlgmr.msra.gmra.mxu1 %v717_v47  ;;  %v722_v4 = vmul.f32 %v669_v45, %v575_v58  ;;  %v1791_v50 = vld [vmem:[%s1822_s7] ss:$0 sm:$0xff]  ;;  %s1616_s7 = smov [#allocation12]  }
 0x12b   :  { %v1288_v52 = vpop.f32.mrf.mxu0  ;;  %v1320_v54 = vpop.f32.mrf.mxu1  ;;  %1420 = vmatprep.mubr.f32.mxu1 %v718_v49  ;;  %s1130_s1 = sshll.u32 %s1616_s7, 4  ;;  %s1131_s1 = int_to_ptr.vmem [resolvable:$true] %s1130_s1 }
 0x12c   :  { %v720_v56 = vmul.f32 %v659_v33, %v573_v51  ;;  %v576_v0 = vadd.f32 %v1320_v54, %v1288_v52  ;;  %s1578_s22 = scalar_lea.vmem %s1131_s1, 2048  ;;  %p1583_p12 = scmp.lt.s32.totalorder %s1131_s1, %s1131_s1 }
 0x12d   :  { %v316_v57 = vpop.f32.mrf.mxu0  ;;  %v525_v59 = vpop.f32.mrf.mxu1  ;;  %p1579_p11 = scmp.ne.s32.totalorder %s1131_s1, %s1578_s22  ;;  %p1584_p13 = scmp.lt.s32.totalorder %s1578_s22, %s1578_s22 }
 0x12e   :  { %v574_v61 = vadd.f32 %v525_v59, %v316_v57  ;;  %1421 = vmatmul.mubr.f32.gmra.mxu1 %v719_v55  ;;  %v723_v10 = vmul.f32 %v674_v53, %v576_v0 }
 0x12f   :  { %v1291_v62 = vpop.f32.mrf.mxu0  ;;  %v1323_v63 = vpop.f32.mrf.mxu1  ;;  %1423 = vmatprep.mubr.f32.mxu1 %v720_v56  ;;  %p1585_p0 = por %p1584_p13, %p1583_p12 }
 0x130   :  { %v721_v1 = vmul.f32 %v664_v39, %v574_v61  ;;  %v579_v13 = vadd.f32 %v1323_v63, %v1291_v62  ;;  %v714_v39 = vpop.permute.xlu1 %713 }
 0x131   :  { %v329_v2 = vpop.f32.mrf.mxu0  ;;  %v538_v5 = vpop.f32.mrf.mxu1  ;;  %p1586_p1 = pnand %p1585_p0, %p1579_p11 }
 0x132   :  { %v577_v6 = vadd.f32 %v538_v5, %v329_v2  ;;  %1424 = vmatmul.mubr.f32.gmra.mxu1 %v721_v1  ;;  %v726_v22 = vmul.f32 %v689_v9, %v579_v13 }
 0x133   :  { %v1292_v7 = vpop.f32.mrf.mxu0  ;;  %v1324_v8 = vpop.f32.mrf.mxu1  ;;  %1426 = vmatprep.mubr.f32.mxu1 %v722_v4 }
 0x134   :  { %v724_v11 = vmul.f32 %v679_v60, %v577_v6  ;;  %v580_v19 = vadd.f32 %v1324_v8, %v1292_v7 }
 0x135   :  { %v332_v12 = vpop.f32.mrf.mxu0  ;;  %v541_v14 = vpop.f32.mrf.mxu1 }
 0x136   :  { %v578_v15 = vadd.f32 %v541_v14, %v332_v12  ;;  %1427 = vmatmul.mubr.f32.gmra.mxu1 %v723_v10  ;;  %v727_v28 = vmul.f32 %v694_v17, %v580_v19 }
 0x137   :  { %v1295_v16 = vpop.f32.mrf.mxu0  ;;  %v1327_v18 = vpop.f32.mrf.mxu1  ;;  %1429 = vmatprep.mubr.f32.mxu1 %v724_v11 }
 0x138   :  { %v725_v20 = vmul.f32 %v684_v3, %v578_v15  ;;  %v583_v32 = vadd.f32 %v1327_v18, %v1295_v16 }
 0x139   :  { %v345_v21 = vpop.f32.mrf.mxu0  ;;  %v554_v23 = vpop.f32.mrf.mxu1 }
 0x13a   :  { %v581_v25 = vadd.f32 %v554_v23, %v345_v21  ;;  %1430 = vmatmul.mubr.f32.gmra.mxu1 %v725_v20  ;;  %v730_v38 = vmul.f32 %v709_v35, %v583_v32 }
 0x13b   :  { %v1296_v26 = vpop.f32.mrf.mxu0  ;;  %v1328_v27 = vpop.f32.mrf.mxu1  ;;  %1432 = vmatprep.mubr.f32.mxu1 %v726_v22 }
 0x13c   :  { %v728_v29 = vmul.f32 %v699_v24, %v581_v25  ;;  %v584_v36 = vadd.f32 %v1328_v27, %v1296_v26 }
 0x13d   :  { %v348_v30 = vpop.f32.mrf.mxu0  ;;  %v557_v33 = vpop.f32.mrf.mxu1 }
 0x13e   :  { %v582_v34 = vadd.f32 %v557_v33, %v348_v30  ;;  %1433 = vmatmul.mubr.f32.gmra.mxu1 %v727_v28  ;;  %v731_v40 = vmul.f32 %v714_v39, %v584_v36 }
 0x13f   :  { %1435 = vmatprep.mubr.f32.mxu1 %v728_v29 }
 0x140   :  { %v729_v37 = vmul.f32 %v704_v31, %v582_v34 }
 0x142   :  { %1436 = vmatmul.mubr.f32.gmra.mxu1 %v729_v37 }
 0x143   :  { %1438 = vmatprep.mubr.f32.mxu1 %v730_v38 }
 0x146   :  { %1439 = vmatmul.mubr.f32.gmra.mxu1 %v731_v40  ;;  %v1363_v41 = vpop.f32.mrf.mxu0 }
 0x148   :  { %v846_v42 = vpop.f32.mrf.mxu0 }
 0x14a   :  { %v1366_v43 = vpop.f32.mrf.mxu0 }
 0x14c   :  { %v856_v44 = vpop.f32.mrf.mxu0 }
 0x14e   :  { %v1369_v45 = vpop.f32.mrf.mxu0 }
 0x150   :  { %v866_v46 = vpop.f32.mrf.mxu0 }
 0x152   :  { %v1372_v47 = vpop.f32.mrf.mxu0 }
 0x154   :  { %v876_v48 = vpop.f32.mrf.mxu0 }
 0x156   :  { %v1375_v53 = vpop.f32.mrf.mxu0 }
 0x158   :  { %v886_v61 = vpop.f32.mrf.mxu0 }
 0x15a   :  { %v1378_v6 = vpop.f32.mrf.mxu0 }
 0x15c   :  { %v896_v15 = vpop.f32.mrf.mxu0 }
 0x15e   :  { %v1381_v24 = vpop.f32.mrf.mxu0 }
 0x160   :  { %v906_v33 = vpop.f32.mrf.mxu0 }
 0x1ea   :  { %v1419_v49 = vpop.f32.mrf.mxu1 }
 0x1eb   :  { %v997_v51 = vadd.f32 %v1419_v49, %v1363_v41  ;;  %v1384_v41 = vpop.f32.mrf.mxu0 }
 0x1ec   :  { %v991_v52 = vpop.f32.mrf.mxu1 }
 0x1ed   :  { %v1078_v54 = vadd.f32 %v1791_v50, %v997_v51  ;;  %v992_v55 = vadd.f32 %v991_v52, %v846_v42  ;;  %v916_v51 = vpop.f32.mrf.mxu0 }
 0x1ee   :  { %v1422_v56 = vpop.f32.mrf.mxu1 }
 0x1ef   :  { %v1094_v57 = vmax.f32 %v1078_v54, 0.0  ;;  %v1077_v58 = vadd.f32 %v1791_v50, %v992_v55  ;;  %v1007_v59 = vadd.f32 %v1422_v56, %v1366_v43 }
 0x1f0   :  { %v1001_v60 = vpop.f32.mrf.mxu1 }
 0x1f1   :  { %1110 = vst [vmem:[#allocation12 + $0x8] sm:$0xff] %v1094_v57  ;;  %v1093_v62 = vmax.f32 %v1077_v58, 0.0  ;;  %v1080_v63 = vadd.f32 %v1791_v50, %v1007_v59  ;;  %v1002_v0 = vadd.f32 %v1001_v60, %v856_v44 }
 0x1f2   :  { %v1425_v1 = vpop.f32.mrf.mxu1 }
 0x1f3   :  { %1109 = vst [vmem:[#allocation12] sm:$0xff] %v1093_v62  ;;  %v1096_v2 = vmax.f32 %v1080_v63, 0.0  ;;  %v1079_v3 = vadd.f32 %v1791_v50, %v1002_v0  ;;  %v1017_v4 = vadd.f32 %v1425_v1, %v1369_v45 }
 0x1f4   :  { %v1011_v5 = vpop.f32.mrf.mxu1 }
 0x1f5   :  { %1112 = vst [vmem:[#allocation12 + $0x18] sm:$0xff] %v1096_v2  ;;  %v1095_v7 = vmax.f32 %v1079_v3, 0.0  ;;  %v1082_v8 = vadd.f32 %v1791_v50, %v1017_v4  ;;  %v1012_v9 = vadd.f32 %v1011_v5, %v866_v46 }
 0x1f6   :  { %v1428_v10 = vpop.f32.mrf.mxu1 }
 0x1f7   :  { %1111 = vst [vmem:[#allocation12 + $0x10] sm:$0xff] %v1095_v7  ;;  %v1098_v11 = vmax.f32 %v1082_v8, 0.0  ;;  %v1081_v12 = vadd.f32 %v1791_v50, %v1012_v9  ;;  %v1027_v13 = vadd.f32 %v1428_v10, %v1372_v47 }
 0x1f8   :  { %v1021_v14 = vpop.f32.mrf.mxu1 }
 0x1f9   :  { %1114 = vst [vmem:[#allocation12 + $0x28] sm:$0xff] %v1098_v11  ;;  %v1097_v16 = vmax.f32 %v1081_v12, 0.0  ;;  %v1084_v17 = vadd.f32 %v1791_v50, %v1027_v13  ;;  %v1022_v18 = vadd.f32 %v1021_v14, %v876_v48 }
 0x1fa   :  { %v1431_v19 = vpop.f32.mrf.mxu1 }
 0x1fb   :  { %1113 = vst [vmem:[#allocation12 + $0x20] sm:$0xff] %v1097_v16  ;;  %v1100_v20 = vmax.f32 %v1084_v17, 0.0  ;;  %v1083_v21 = vadd.f32 %v1791_v50, %v1022_v18  ;;  %v1037_v22 = vadd.f32 %v1431_v19, %v1375_v53 }
 0x1fc   :  { %v1031_v23 = vpop.f32.mrf.mxu1 }
 0x1fd   :  { %1116 = vst [vmem:[#allocation12 + $0x38] sm:$0xff] %v1100_v20  ;;  %v1099_v25 = vmax.f32 %v1083_v21, 0.0  ;;  %v1086_v26 = vadd.f32 %v1791_v50, %v1037_v22  ;;  %v1032_v27 = vadd.f32 %v1031_v23, %v886_v61 }
 0x1fe   :  { %v1434_v28 = vpop.f32.mrf.mxu1 }
 0x1ff   :  { %1115 = vst [vmem:[#allocation12 + $0x30] sm:$0xff] %v1099_v25  ;;  %v1102_v29 = vmax.f32 %v1086_v26, 0.0  ;;  %v1085_v30 = vadd.f32 %v1791_v50, %v1032_v27  ;;  %v1047_v31 = vadd.f32 %v1434_v28, %v1378_v6 }
 0x200   :  { %v1041_v32 = vpop.f32.mrf.mxu1 }
 0x201   :  { %1118 = vst [vmem:[#allocation12 + $0x48] sm:$0xff] %v1102_v29  ;;  %v1101_v34 = vmax.f32 %v1085_v30, 0.0  ;;  %v1088_v35 = vadd.f32 %v1791_v50, %v1047_v31  ;;  %v1042_v36 = vadd.f32 %v1041_v32, %v896_v15 }
 0x202   :  { %v1437_v37 = vpop.f32.mrf.mxu1 }
 0x203   :  { %1117 = vst [vmem:[#allocation12 + $0x40] sm:$0xff] %v1101_v34  ;;  %v1104_v38 = vmax.f32 %v1088_v35, 0.0  ;;  %v1087_v39 = vadd.f32 %v1791_v50, %v1042_v36  ;;  %v1057_v40 = vadd.f32 %v1437_v37, %v1381_v24 }
 0x204   :  { %v1051_v42 = vpop.f32.mrf.mxu1 }
 0x205   :  { %1120 = vst [vmem:[#allocation12 + $0x58] sm:$0xff] %v1104_v38  ;;  %v1103_v43 = vmax.f32 %v1087_v39, 0.0  ;;  %v1090_v44 = vadd.f32 %v1791_v50, %v1057_v40  ;;  %v1052_v45 = vadd.f32 %v1051_v42, %v906_v33 }
 0x206   :  { %v1440_v46 = vpop.f32.mrf.mxu1 }
 0x207   :  { %1119 = vst [vmem:[#allocation12 + $0x50] sm:$0xff] %v1103_v43  ;;  %v1106_v47 = vmax.f32 %v1090_v44, 0.0  ;;  %v1089_v48 = vadd.f32 %v1791_v50, %v1052_v45  ;;  %v1067_v49 = vadd.f32 %v1440_v46, %v1384_v41 }
 0x208   :  { %v1061_v52 = vpop.f32.mrf.mxu1 }
 0x209   :  { %1122 = vst [vmem:[#allocation12 + $0x68] sm:$0xff] %v1106_v47  ;;  %v1105_v53 = vmax.f32 %v1089_v48, 0.0  ;;  %v1092_v54 = vadd.f32 %v1791_v50, %v1067_v49  ;;  %v1062_v55 = vadd.f32 %v1061_v52, %v916_v51 }
 0x20b   :  { %1121 = vst [vmem:[#allocation12 + $0x60] sm:$0xff] %v1105_v53  ;;  %v1108_v56 = vmax.f32 %v1092_v54, 0.0  ;;  %v1091_v57 = vadd.f32 %v1791_v50, %v1062_v55 }
 0x20d   :  { %1124 = vst [vmem:[#allocation12 + $0x78] sm:$0xff] %v1108_v56  ;;  %v1107_v58 = vmax.f32 %v1091_v57, 0.0 }
 0x20f   :  { %1123 = vst [vmem:[#allocation12 + $0x70] sm:$0xff] %v1107_v58 }
 0x210   :  { %1589 = shalt.err (!%p1586_p1)
}
 0x211   :  { %1136 = dma.vmem_to_hbm [thread:$0]  %s1131_s1, 2048, %s1823_s8, [#allocation5], %s1610_s15, %s1610_s15, %s1611_s16  }
 0x212   :  { %1604 = dma.done.wait [#allocation5], 2048  }
 0x213   :  { %1605 = vsyncadd [#allocation5], 4294965248 }
 0x214   :  { %1140 = vsyncpa [#allocation4], 1 }
 0x215   :  { %1141 = vsyncpa [#allocation7], 1 }
 0x216   :  { %1142 = vsyncpa [#allocation10], 1 }
 0x217   :  { %1143 = vsyncpa [#allocation5], 1 }

</bundles_post_ra>
